<compile_context>
chip_gen: v7x
topology: tpu7x:2x2x1
jax: 0.10.0
libtpu: 0.0.40
codegen_flags: <defaults>
</compile_context>

<pallas_src>
import functools

import jax
import jax.numpy as jnp
from jax.experimental import pallas as pl
from jax.experimental.pallas import tpu as pltpu


def _round_up(n, m):
    return ((n + m - 1) // m) * m


_HAS_BUFFERED = hasattr(pl, "Buffered")


def _resident_spec(shape):
    """BlockSpec for a weight/bias that stays resident in VMEM across the grid.

    Constant index_map; single-buffered (Buffered(1)) since the block never
    changes, halving its VMEM footprint vs. the default double buffering.
    """
    if _HAS_BUFFERED:
        return pl.BlockSpec(shape, lambda i: (0, 0), pipeline_mode=pl.Buffered(1))
    return pl.BlockSpec(shape, lambda i: (0, 0))


def _policy_kernel(*refs, num_hidden, output_bound, mu_pad):
    """Fused MLP kernel (one batch tile per grid step).

    refs layout:
      [x_ref,                                  # (TB, input_size)       f32
       w_0, b_0, ..., w_{H-1}, b_{H-1},        # hidden layers, resident
       w_head, b_head,                         # fused [mu | std] head, resident
       out_ref]                                # (TB, mu_pad + std_pad) f32
    """
    x_ref = refs[0]
    hidden_refs = refs[1:1 + 2 * num_hidden]
    w_head_ref = refs[1 + 2 * num_hidden]
    b_head_ref = refs[2 + 2 * num_hidden]
    out_ref = refs[-1]

    h = x_ref[...].astype(jnp.float32)
    # Static Python loop over layers (unrolled; LLO scheduler sees everything).
    for i in range(num_hidden):
        w = hidden_refs[2 * i][...]                       # possibly bf16
        b = hidden_refs[2 * i + 1][...].astype(jnp.float32)   # (1, dim) broadcast
        z = jnp.dot(h.astype(w.dtype), w, preferred_element_type=jnp.float32) + b
        h = jnp.maximum(z, 0.0)                           # ReLU in f32

    # Single fused head matmul; columns [0, mu_pad) are mu logits,
    # [mu_pad, mu_pad + std_pad) are std logits (both slabs 128-aligned).
    w_head = w_head_ref[...]
    z = jnp.dot(h.astype(w_head.dtype), w_head,
                preferred_element_type=jnp.float32) + b_head_ref[...].astype(jnp.float32)

    z_mu = z[:, :mu_pad]
    z_std = z[:, mu_pad:]
    mu = output_bound * jnp.tanh(z_mu)
    # Numerically stable softplus: max(z, 0) + log1p(exp(-|z|)), f32.
    std = jnp.maximum(z_std, 0.0) + jnp.log1p(jnp.exp(-jnp.abs(z_std)))

    out_ref[:, :mu_pad] = mu
    out_ref[:, mu_pad:] = std


def prepare_params(params, *, dtype=jnp.bfloat16):
    """One-time padding / casting of parameters (hoisted out of the call path).

    params: {'hidden': [(W_i, b_i), ...], 'mu': (W, b), 'std': (W, b)},
    weights in (in, out) layout (transpose of torch Linear.weight).
    Weights are cast to `dtype` (bf16 by default: half the HBM/VMEM traffic,
    full-rate MXU on v5e/v6e/v7x); biases stay f32.  All output feature dims
    are zero-padded to multiples of 128 (lane-dense); the first layer's input
    dim is left unpadded so x needs no per-call padding at all.
    """
    hidden = params["hidden"]
    assert len(hidden) >= 1, "ContinuousPolicyNetwork needs at least one hidden layer"
    input_size = hidden[0][0].shape[0]
    output_size = params["mu"][0].shape[1]
    hidden_dims = [w.shape[1] for (w, _) in hidden]
    dims_pad = [input_size] + [_round_up(d, 128) for d in hidden_dims]
    mu_pad = _round_up(output_size, 128)
    std_pad = _round_up(output_size, 128)

    flat = []
    for li, (w, b) in enumerate(hidden):
        ip, op = dims_pad[li], dims_pad[li + 1]
        w_p = jnp.zeros((ip, op), dtype).at[: w.shape[0], : w.shape[1]].set(w.astype(dtype))
        b_p = jnp.zeros((1, op), jnp.float32).at[0, : b.shape[0]].set(b.astype(jnp.float32))
        flat += [w_p, b_p]

    # Fused head: [W_mu | W_std] in two 128-aligned slabs.
    w_mu, b_mu = params["mu"]
    w_std, b_std = params["std"]
    hp = dims_pad[-1]
    w_head = jnp.zeros((hp, mu_pad + std_pad), dtype)
    w_head = w_head.at[: w_mu.shape[0], :output_size].set(w_mu.astype(dtype))
    w_head = w_head.at[: w_std.shape[0], mu_pad:mu_pad + output_size].set(w_std.astype(dtype))
    b_head = jnp.zeros((1, mu_pad + std_pad), jnp.float32)
    b_head = b_head.at[0, :output_size].set(b_mu.astype(jnp.float32))
    b_head = b_head.at[0, mu_pad:mu_pad + output_size].set(b_std.astype(jnp.float32))
    flat += [w_head, b_head]

    return {
        "flat": tuple(flat),
        "num_hidden": len(hidden),
        "input_size": int(input_size),
        "output_size": int(output_size),
        "dims_pad": tuple(int(d) for d in dims_pad),
        "mu_pad": int(mu_pad),
        "std_pad": int(std_pad),
    }


def continuous_policy_forward(x, prepared, output_bound, *, block_batch=512):
    """Run the fused policy MLP. `prepared` comes from prepare_params()."""
    x = x.astype(jnp.float32)
    batch, input_size = x.shape
    assert input_size == prepared["input_size"]

    num_hidden = prepared["num_hidden"]
    output_size = prepared["output_size"]
    mu_pad, std_pad = prepared["mu_pad"], prepared["std_pad"]
    head_pad = mu_pad + std_pad
    dims_pad = prepared["dims_pad"]
    flat = prepared["flat"]

    # ---- balanced batch tiling ---------------------------------------------
    # n_tiles >= 2 (when batch > 8) so the "parallel" axis can shard across
    # both v7x TensorCores; balanced TB keeps batch padding under one sublane
    # group per tile (no ~2x padded-work blowups).
    n_tiles = max(pl.cdiv(batch, block_batch), 2 if batch > 8 else 1)
    TB = _round_up(pl.cdiv(batch, n_tiles), 8)
    grid = (pl.cdiv(batch, TB),)

    # ---- block specs ---------------------------------------------------------
    in_specs = [pl.BlockSpec((TB, input_size), lambda i: (i, 0))]   # streamed
    for a in flat:
        in_specs.append(_resident_spec(a.shape))                    # resident
    out_spec = pl.BlockSpec((TB, head_pad), lambda i: (i, 0))        # lane-dense

    kernel = functools.partial(
        _policy_kernel,
        num_hidden=num_hidden,
        output_bound=float(output_bound),
        mu_pad=mu_pad,
    )

    # ---- VMEM budget (derived, capped at 0.75 * physical VMEM) --------------
    weight_bytes = sum(int(a.size) * jnp.dtype(a.dtype).itemsize for a in flat)
    max_dim = max(list(dims_pad) + [head_pad])
    stream_bytes = 2 * TB * (input_size + head_pad) * 4       # double-buffered x/out
    act_bytes = 6 * TB * max_dim * 4                           # activation headroom
    needed = weight_bytes + stream_bytes + act_bytes
    try:
        cap = int(pltpu.get_tpu_info().vmem_capacity_bytes)
    except Exception:
        cap = 128 * 1024 * 1024
    vmem_limit = int(min(max(1.5 * needed, 32 * 1024 * 1024), 0.75 * cap))

    # ---- cost estimate (advisory) --------------------------------------------
    flops = 2 * batch * sum(dims_pad[i] * dims_pad[i + 1] for i in range(num_hidden))
    flops += 2 * batch * dims_pad[-1] * head_pad
    transcendentals = batch * (mu_pad + 2 * std_pad)           # tanh; exp + log1p
    bytes_accessed = 4 * x.size + weight_bytes + 4 * batch * head_pad

    out = pl.pallas_call(
        kernel,
        out_shape=jax.ShapeDtypeStruct((batch, head_pad), jnp.float32),
        grid=grid,
        in_specs=in_specs,
        out_specs=out_spec,
        compiler_params=pltpu.CompilerParams(
            dimension_semantics=("parallel",),
            vmem_limit_bytes=vmem_limit,
        ),
        cost_estimate=pl.CostEstimate(
            flops=int(flops),
            transcendentals=int(transcendentals),
            bytes_accessed=int(bytes_accessed),
        ),
    )(x, *flat)

    mu = out[:, :output_size]
    std = out[:, mu_pad:mu_pad + output_size]
    return mu, std


def init_params(key, input_size, layers_dim, output_size):
    """Deterministic parameter init (uniform, PyTorch-Linear-like bounds)."""
    params = {"hidden": []}
    dims = [input_size] + list(layers_dim)
    keys = jax.random.split(key, 2 * (len(layers_dim) + 2))
    k = 0
    for i in range(len(layers_dim)):
        fan_in, fan_out = dims[i], dims[i + 1]
        bound = 1.0 / jnp.sqrt(fan_in)
        w = jax.random.uniform(keys[k], (fan_in, fan_out), jnp.float32, -bound, bound)
        b = jax.random.uniform(keys[k + 1], (fan_out,), jnp.float32, -bound, bound)
        params["hidden"].append((w, b))
        k += 2
    for name in ("mu", "std"):
        fan_in = layers_dim[-1]
        bound = 1.0 / jnp.sqrt(fan_in)
        w = jax.random.uniform(keys[k], (fan_in, output_size), jnp.float32, -bound, bound)
        b = jax.random.uniform(keys[k + 1], (output_size,), jnp.float32, -bound, bound)
        params[name] = (w, b)
        k += 2
    return params


def reference_forward(x, params, output_bound):
    h = x
    for (w, b) in params["hidden"]:
        h = jax.nn.relu(h @ w + b)
    mu = output_bound * jnp.tanh(h @ params["mu"][0] + params["mu"][1])
    std = jax.nn.softplus(h @ params["std"][0] + params["std"][1])
    return mu, std


if __name__ == "__main__":
    key = jax.random.PRNGKey(0)
    k_x, k_p = jax.random.split(key)

    batch = 4
    input_size = 16
    layers_dim = (32, 32)
    output_size = 8
    output_bound = 2.0

    x = jax.random.normal(k_x, (batch, input_size), jnp.float32)
    params = init_params(k_p, input_size, layers_dim, output_size)
    mu_ref, std_ref = reference_forward(x, params, output_bound)

    # Exact-precision path (f32 weights) -- tight tolerance check.
    prep_f32 = prepare_params(params, dtype=jnp.float32)
    mu, std = continuous_policy_forward(x, prep_f32, output_bound)
    jax.block_until_ready((mu, std))
    assert mu.shape == (batch, output_size) and std.shape == (batch, output_size)
    assert jnp.allclose(mu, mu_ref, atol=1e-5, rtol=1e-5)
    assert jnp.allclose(std, std_ref, atol=1e-5, rtol=1e-5)

    # Production path (bf16 MXU operands, f32 accumulate/activations).
    prep_bf16 = prepare_params(params, dtype=jnp.bfloat16)
    mu16, std16 = continuous_policy_forward(x, prep_bf16, output_bound)
    jax.block_until_ready((mu16, std16))
    assert jnp.allclose(mu16, mu_ref, atol=5e-2, rtol=5e-2)
    assert jnp.allclose(std16, std_ref, atol=5e-2, rtol=5e-2)

    print("KERNEL_OK")
</pallas_src>

<mosaic_0001>
module attributes {stable_mosaic.version = 11 : i64} {
  func.func @_policy_kernel(%arg0: i32, %arg1: memref<8x16xf32, #tpu.memory_space<vmem>>, %arg2: memref<16x128xf32, #tpu.memory_space<vmem>>, %arg3: memref<1x128xf32, #tpu.memory_space<vmem>>, %arg4: memref<128x128xf32, #tpu.memory_space<vmem>>, %arg5: memref<1x128xf32, #tpu.memory_space<vmem>>, %arg6: memref<128x256xf32, #tpu.memory_space<vmem>>, %arg7: memref<1x256xf32, #tpu.memory_space<vmem>>, %arg8: memref<8x256xf32, #tpu.memory_space<vmem>>) attributes {dimension_semantics = [#tpu.dimension_semantics<parallel>], iteration_bounds = array<i64: 1>, scalar_prefetch = 0 : i64, scratch_operands = 0 : i64, tpu.core_type = #tpu.core_type<tc>, window_params = [{transform_indices = @transform_0, window_bounds = array<i64: 8, 16>}, {pipeline_mode = #tpu.pipeline_mode<synchronous>, transform_indices = @transform_1, window_bounds = array<i64: 16, 128>}, {pipeline_mode = #tpu.pipeline_mode<synchronous>, transform_indices = @transform_2, window_bounds = array<i64: 1, 128>}, {pipeline_mode = #tpu.pipeline_mode<synchronous>, transform_indices = @transform_3, window_bounds = array<i64: 128, 128>}, {pipeline_mode = #tpu.pipeline_mode<synchronous>, transform_indices = @transform_4, window_bounds = array<i64: 1, 128>}, {pipeline_mode = #tpu.pipeline_mode<synchronous>, transform_indices = @transform_5, window_bounds = array<i64: 128, 256>}, {pipeline_mode = #tpu.pipeline_mode<synchronous>, transform_indices = @transform_6, window_bounds = array<i64: 1, 256>}, {transform_indices = @transform_7, window_bounds = array<i64: 8, 256>}]} {
    %c0 = arith.constant 0 : index
    %c0_0 = arith.constant 0 : index
    %0 = vector.load %arg1[%c0, %c0_0] : memref<8x16xf32, #tpu.memory_space<vmem>>, vector<8x16xf32>
    %c0_1 = arith.constant 0 : index
    %c0_2 = arith.constant 0 : index
    %1 = vector.load %arg2[%c0_1, %c0_2] : memref<16x128xf32, #tpu.memory_space<vmem>>, vector<16x128xf32>
    %c0_3 = arith.constant 0 : index
    %c0_4 = arith.constant 0 : index
    %2 = vector.load %arg3[%c0_3, %c0_4] : memref<1x128xf32, #tpu.memory_space<vmem>>, vector<1x128xf32>
    %cst = arith.constant dense<0.000000e+00> : vector<8x128xf32>
    %3 = tpu.matmul %0, %1, %cst {dimension_numbers = #tpu.dot_dimension_numbers<[1], [0], [0], [1], [0, 0, 1, 1], [], []>} : vector<8x16xf32>, vector<16x128xf32>, vector<8x128xf32> -> vector<8x128xf32>
    %4 = vector.broadcast %2 : vector<1x128xf32> to vector<8x128xf32>
    %5 = arith.addf %3, %4 : vector<8x128xf32>
    %cst_5 = arith.constant 0.000000e+00 : f32
    %6 = vector.broadcast %cst_5 : f32 to vector<8x128xf32>
    %7 = arith.maximumf %5, %6 : vector<8x128xf32>
    %c0_6 = arith.constant 0 : index
    %c0_7 = arith.constant 0 : index
    %8 = vector.load %arg4[%c0_6, %c0_7] : memref<128x128xf32, #tpu.memory_space<vmem>>, vector<128x128xf32>
    %c0_8 = arith.constant 0 : index
    %c0_9 = arith.constant 0 : index
    %9 = vector.load %arg5[%c0_8, %c0_9] : memref<1x128xf32, #tpu.memory_space<vmem>>, vector<1x128xf32>
    %cst_10 = arith.constant dense<0.000000e+00> : vector<8x128xf32>
    %10 = tpu.matmul %7, %8, %cst_10 {dimension_numbers = #tpu.dot_dimension_numbers<[1], [0], [0], [1], [0, 0, 1, 1], [], []>} : vector<8x128xf32>, vector<128x128xf32>, vector<8x128xf32> -> vector<8x128xf32>
    %11 = vector.broadcast %9 : vector<1x128xf32> to vector<8x128xf32>
    %12 = arith.addf %10, %11 : vector<8x128xf32>
    %cst_11 = arith.constant 0.000000e+00 : f32
    %13 = vector.broadcast %cst_11 : f32 to vector<8x128xf32>
    %14 = arith.maximumf %12, %13 : vector<8x128xf32>
    %c0_12 = arith.constant 0 : index
    %c0_13 = arith.constant 0 : index
    %15 = vector.load %arg6[%c0_12, %c0_13] : memref<128x256xf32, #tpu.memory_space<vmem>>, vector<128x256xf32>
    %cst_14 = arith.constant dense<0.000000e+00> : vector<8x256xf32>
    %16 = tpu.matmul %14, %15, %cst_14 {dimension_numbers = #tpu.dot_dimension_numbers<[1], [0], [0], [1], [0, 0, 1, 1], [], []>} : vector<8x128xf32>, vector<128x256xf32>, vector<8x256xf32> -> vector<8x256xf32>
    %c0_15 = arith.constant 0 : index
    %c0_16 = arith.constant 0 : index
    %17 = vector.load %arg7[%c0_15, %c0_16] : memref<1x256xf32, #tpu.memory_space<vmem>>, vector<1x256xf32>
    %18 = vector.broadcast %17 : vector<1x256xf32> to vector<8x256xf32>
    %19 = arith.addf %16, %18 : vector<8x256xf32>
    %20 = vector.extract_strided_slice %19 {offsets = [0, 0], sizes = [8, 128], strides = [1, 1]} : vector<8x256xf32> to vector<8x128xf32>
    %21 = vector.extract_strided_slice %19 {offsets = [0, 128], sizes = [8, 128], strides = [1, 1]} : vector<8x256xf32> to vector<8x128xf32>
    %22 = math.tanh %20 : vector<8x128xf32>
    %cst_17 = arith.constant 2.000000e+00 : f32
    %23 = vector.broadcast %cst_17 : f32 to vector<8x128xf32>
    %24 = arith.mulf %23, %22 : vector<8x128xf32>
    %cst_18 = arith.constant 0.000000e+00 : f32
    %25 = vector.broadcast %cst_18 : f32 to vector<8x128xf32>
    %26 = arith.maximumf %21, %25 : vector<8x128xf32>
    %27 = math.absf %21 : vector<8x128xf32>
    %cst_19 = arith.constant 0.000000e+00 : f32
    %28 = vector.broadcast %cst_19 : f32 to vector<8x128xf32>
    %29 = arith.subf %28, %27 : vector<8x128xf32>
    %30 = math.exp %29 : vector<8x128xf32>
    %31 = math.log1p %30 : vector<8x128xf32>
    %32 = arith.addf %26, %31 : vector<8x128xf32>
    %c0_20 = arith.constant 0 : index
    %c0_21 = arith.constant 0 : index
    %33 = vector.load %arg8[%c0_20, %c0_21] : memref<8x256xf32, #tpu.memory_space<vmem>>, vector<8x128xf32>
    tpu.vector_store %arg8[%c0_20, %c0_21], %24 {strides = array<i32>} : memref<8x256xf32, #tpu.memory_space<vmem>>, vector<8x128xf32>,
    %c0_22 = arith.constant 0 : index
    %c128 = arith.constant 128 : index
    %34 = vector.load %arg8[%c0_22, %c128] : memref<8x256xf32, #tpu.memory_space<vmem>>, vector<8x128xf32>
    tpu.vector_store %arg8[%c0_22, %c128], %32 {strides = array<i32>} : memref<8x256xf32, #tpu.memory_space<vmem>>, vector<8x128xf32>,
    return
  }
  func.func @transform_0(%arg0: i32) -> (i32, i32) {
    %c0_i32 = arith.constant 0 : i32
    %c0_i32_0 = arith.constant 0 : i32
    return %arg0, %c0_i32 : i32, i32
  }
  func.func @transform_1(%arg0: i32) -> (i32, i32) {
    %c0_i32 = arith.constant 0 : i32
    %c0_i32_0 = arith.constant 0 : i32
    %c0_i32_1 = arith.constant 0 : i32
    return %c0_i32, %c0_i32_0 : i32, i32
  }
  func.func @transform_2(%arg0: i32) -> (i32, i32) {
    %c0_i32 = arith.constant 0 : i32
    %c0_i32_0 = arith.constant 0 : i32
    %c0_i32_1 = arith.constant 0 : i32
    return %c0_i32, %c0_i32_0 : i32, i32
  }
  func.func @transform_3(%arg0: i32) -> (i32, i32) {
    %c0_i32 = arith.constant 0 : i32
    %c0_i32_0 = arith.constant 0 : i32
    %c0_i32_1 = arith.constant 0 : i32
    return %c0_i32, %c0_i32_0 : i32, i32
  }
  func.func @transform_4(%arg0: i32) -> (i32, i32) {
    %c0_i32 = arith.constant 0 : i32
    %c0_i32_0 = arith.constant 0 : i32
    %c0_i32_1 = arith.constant 0 : i32
    return %c0_i32, %c0_i32_0 : i32, i32
  }
  func.func @transform_5(%arg0: i32) -> (i32, i32) {
    %c0_i32 = arith.constant 0 : i32
    %c0_i32_0 = arith.constant 0 : i32
    %c0_i32_1 = arith.constant 0 : i32
    return %c0_i32, %c0_i32_0 : i32, i32
  }
  func.func @transform_6(%arg0: i32) -> (i32, i32) {
    %c0_i32 = arith.constant 0 : i32
    %c0_i32_0 = arith.constant 0 : i32
    %c0_i32_1 = arith.constant 0 : i32
    return %c0_i32, %c0_i32_0 : i32, i32
  }
  func.func @transform_7(%arg0: i32) -> (i32, i32) {
    %c0_i32 = arith.constant 0 : i32
    %c0_i32_0 = arith.constant 0 : i32
    return %arg0, %c0_i32 : i32, i32
  }
}

</mosaic_0001>

<bundles_post_ra>
// kernel: tpu_custom_call.1
= control target key start
LH: loop header
LB: loop body
LE: loop exit
PB: predicated region body
PF: predicated region fallthrough
CT: control target
= control target key end

     0   :  { %12 = vsyncpa [#allocation3], 0  ;;  %s823_s0 = inlined_call_operand.hbm [shape: f32[4,16], index: 0, kind: input, shape index: {}]   ;;  %s824_s1 = inlined_call_operand.hbm [shape: f32[16,128], index: 1, kind: input, shape index: {}]   ;;  %s825_s2 = inlined_call_operand.vmem [shape: f32[1,128], index: 2, kind: input, shape index: {}]   ;;  %s826_s3 = inlined_call_operand.hbm [shape: f32[128,128], index: 3, kind: input, shape index: {}]   ;;  %s827_s4 = inlined_call_operand.vmem [shape: f32[1,128], index: 4, kind: input, shape index: {}]   ;;  %s828_s5 = inlined_call_operand.hbm [shape: f32[128,256], index: 5, kind: input, shape index: {}]   ;;  %s829_s6 = inlined_call_operand.vmem [shape: f32[1,256], index: 6, kind: input, shape index: {}]   ;;  %s830_s7 = inlined_call_operand.hbm [shape: f32[4,256], index: 7, kind: output, shape index: {}]  }
   0x1   :  { %13 = vsyncpa [#allocation6], 0 }
   0x2   :  { %14 = vsyncpa [#allocation9], 0 }
   0x3   :  { %15 = vsyncpa [#allocation4], 0 }
   0x4   :  { %20 = vsyncadd [#allocation3], 64  ;;  %s684_s24 = smov [#allocation5]   ;;  %s566_s28 = scalar_lea.hbm %s824_s1, 256 }
   0x5   :  { %s33_s25 = sshll.u32 %s684_s24, 4  ;;  %p567_p0 = scmp.ne.s32.totalorder %s824_s1, %s566_s28  ;;  %s34_s25 = int_to_ptr.vmem [resolvable:$true] %s33_s25 }
   0x6   :  { %p570_p1 = scmp.lt.u32.totalorder %s566_s28, %s824_s1 }
   0x8   :  { %p572_p2 = pnand %p570_p1, %p567_p0 }
   0xa   :  { %575 = shalt.err (!%p572_p2)
}
   0xb   :  { %s576_s10 = scalar_lea.vmem %s34_s25, 256  ;;  %p581_p4 = scmp.lt.s32.totalorder %s34_s25, %s34_s25 }
   0xc   :  { %p577_p3 = scmp.ne.s32.totalorder %s34_s25, %s576_s10  ;;  %p582_p5 = scmp.lt.s32.totalorder %s576_s10, %s576_s10 }
   0xe   :  { %p583_p6 = por %p582_p5, %p581_p4 }
  0x10   :  { %p584_p7 = pnand %p583_p6, %p577_p3 }
  0x12   :  { %587 = shalt.err (!%p584_p7)
}
  0x13   :  { %s685_s11 = smov 128   ;;  %s686_s12 = smov 8  }
  0x14   :  { %39 = dma.hbm_to_vmem [thread:$0]  %s824_s1, 256, %s34_s25, [#allocation6], %s685_s11, %s685_s11, %s686_s12  }
  0x15   :  { %s687_s15 = smov [#allocation2]   ;;  %s588_s19 = scalar_lea.hbm %s823_s0, 64 }
  0x16   :  { %s21_s16 = sshll.u32 %s687_s15, 4  ;;  %p589_p8 = scmp.ne.s32.totalorder %s823_s0, %s588_s19  ;;  %s22_s16 = int_to_ptr.vmem [resolvable:$true] %s21_s16 }
  0x17   :  { %p592_p9 = scmp.lt.u32.totalorder %s588_s19, %s823_s0 }
  0x19   :  { %p594_p10 = pnand %p592_p9, %p589_p8 }
  0x1b   :  { %597 = shalt.err (!%p594_p10)
}
  0x1c   :  { %s598_s24 = scalar_lea.vmem %s22_s16, 64  ;;  %s602_s1 = scalar_lea.vmem %s22_s16, 128 }
  0x1d   :  { %p599_p11 = scmp.ne.s32.totalorder %s22_s16, %s598_s24  ;;  %p603_p12 = scmp.lt.s32.totalorder %s22_s16, %s22_s16 }
  0x1e   :  { %p604_p13 = scmp.lt.s32.totalorder %s602_s1, %s598_s24 }
  0x20   :  { %p605_p0 = por %p604_p13, %p603_p12 }
  0x22   :  { %p606_p1 = pnand %p605_p0, %p599_p11 }
  0x24   :  { %609 = shalt.err (!%p606_p1)
}
  0x25   :  { %s688_s25 = smov 64   ;;  %s689_s26 = smov 4  }
  0x26   :  { %27 = dma.hbm_to_vmem [thread:$0]  %s823_s0, 64, %s22_s16, [#allocation3], %s688_s25, %s688_s25, %s689_s26  }
  0x27   :  { %s690_s29 = smov [#allocation7]   ;;  %s691_s8 = smov [#allocation8]  }
  0x28   :  { %s47_s30 = sshll.u32 %s690_s29, 4  ;;  %s61_s9 = sshll.u32 %s691_s8, 4  ;;  %s48_s30 = int_to_ptr.vmem [resolvable:$true] %s47_s30  ;;  %s765_s9 = int_to_ptr.vmem [resolvable:$true] %s61_s9 }
  0x29   :  { %s610_s14 = scalar_lea.hbm %s826_s3, 2048 }
  0x2a   :  { %p611_p2 = scmp.ne.s32.totalorder %s826_s3, %s610_s14  ;;  %p614_p3 = scmp.lt.u32.totalorder %s610_s14, %s826_s3 }
  0x2c   :  { %p616_p4 = pnand %p614_p3, %p611_p2 }
  0x2e   :  { %619 = shalt.err (!%p616_p4)
}
  0x2f   :  { %s620_s0 = scalar_lea.vmem %s48_s30, 2048  ;;  %p625_p6 = scmp.lt.s32.totalorder %s48_s30, %s48_s30 }
  0x30   :  { %p621_p5 = scmp.ne.s32.totalorder %s48_s30, %s620_s0  ;;  %p626_p7 = scmp.lt.s32.totalorder %s620_s0, %s620_s0 }
  0x32   :  { %p627_p8 = por %p626_p7, %p625_p6 }
  0x34   :  { %p628_p9 = pnand %p627_p8, %p621_p5 }
  0x36   :  { %631 = shalt.err (!%p628_p9)
}
  0x37   :  { %53 = dma.hbm_to_vmem [thread:$0]  %s826_s3, 2048, %s48_s30, [#allocation6], %s685_s11, %s685_s11, %s686_s12  }
  0x38   :  { %s632_s23 = scalar_lea.hbm %s828_s5, 4096 }
  0x39   :  { %p633_p10 = scmp.ne.s32.totalorder %s828_s5, %s632_s23  ;;  %p636_p11 = scmp.lt.u32.totalorder %s632_s23, %s828_s5 }
  0x3b   :  { %p638_p12 = pnand %p636_p11, %p633_p10 }
  0x3d   :  { %641 = shalt.err (!%p638_p12)
}
  0x3e   :  { %s642_s27 = scalar_lea.vmem %s765_s9, 4096  ;;  %p647_p0 = scmp.lt.s32.totalorder %s765_s9, %s765_s9 }
  0x3f   :  { %p643_p13 = scmp.ne.s32.totalorder %s765_s9, %s642_s27  ;;  %p648_p1 = scmp.lt.s32.totalorder %s642_s27, %s642_s27 }
  0x41   :  { %p649_p2 = por %p648_p1, %p647_p0 }
  0x43   :  { %p650_p3 = pnand %p649_p2, %p643_p13 }
  0x45   :  { %653 = shalt.err (!%p650_p3)
}
  0x46   :  { %s692_s3 = smov 256   ;;  %s693_s28 = smov 16  }
  0x47   :  { %67 = dma.hbm_to_vmem [thread:$0]  %s828_s5, 4096, %s765_s9, [#allocation9], %s692_s3, %s692_s3, %s693_s28  }
  0x48   :  { %676 = dma.done.wait [#allocation3], 128  }
  0x49   :  { %677 = vsyncadd [#allocation3], 4294967168 }
  0x4a   :  { %678 = dma.done.wait [#allocation6], 2304  }
  0x4b   :  { %679 = vsyncadd [#allocation6], 4294964992 }
  0x4c   :  { %680 = dma.done.wait [#allocation9], 4096  }
  0x4d   :  { %681 = vsyncadd [#allocation9], 4294963200  ;;  %v694_v0 = vmov 0.0|0.0   ;;  %vm695_vm0 = vmmov 0   ;;  %v696_v1 = vmov 0.0   ;;  %v83_v2 = vld [vmem:[#allocation5] sm:$0xff] }
  0x4e   :  { %487 = vmatprep.subr.bf16.mxu0 %v694_v0  ;;  %449 = vmatprep.mubr.msk.f32.mxu0 %vm695_vm0, %v696_v1  ;;  %v84_v3 = vld [vmem:[#allocation5 + $0x8] sm:$0xff]  ;;  %v167_v5 = vld [vmem:[#allocation7] sm:$0xff]  ;;  %v168_v6 = vld [vmem:[#allocation7 + $0x8] sm:$0xff]  ;;  %vm92_vm1 = vcmask 130048  }
  0x4f   :  { %490 = vmatprep.subr.bf16.mxu1 %v694_v0  ;;  %484 = vmatprep.mubr.msk.f32.mxu1 %vm695_vm0, %v696_v1  ;;  %v488_v4 = vpack.c.bf16 %v84_v3, %v83_v2  ;;  %v169_v7 = vld [vmem:[#allocation7 + $0x10] sm:$0xff]  ;;  %v491_v8 = vpack.c.bf16 %v168_v6, %v167_v5  ;;  %v170_v9 = vld [vmem:[#allocation7 + $0x18] sm:$0xff]  ;;  %v82_v10 = vld [vmem:[#allocation2] sm:$0xff] }
  0x50   :  { %v494_v11 = vpack.c.bf16 %v170_v9, %v169_v7  ;;  %v171_v12 = vld [vmem:[#allocation7 + $0x20] sm:$0xff]  ;;  %v172_v13 = vld [vmem:[#allocation7 + $0x28] sm:$0xff]  ;;  %v173_v15 = vld [vmem:[#allocation7 + $0x30] sm:$0xff] }
  0x51   :  { %489 = vmatpush3.bf16.msra.mxu0 %v488_v4  ;;  %492 = vmatpush3.bf16.msra.mxu1 %v491_v8  ;;  %v497_v14 = vpack.c.bf16 %v172_v13, %v171_v12  ;;  %v174_v16 = vld [vmem:[#allocation7 + $0x38] sm:$0xff]  ;;  %v175_v18 = vld [vmem:[#allocation7 + $0x40] sm:$0xff]  ;;  %v176_v19 = vld [vmem:[#allocation7 + $0x48] sm:$0xff] }
  0x52   :  { %493 = vmatprep.subr.bf16.mxu1 %v694_v0  ;;  %v500_v17 = vpack.c.bf16 %v174_v16, %v173_v15  ;;  %v503_v20 = vpack.c.bf16 %v176_v19, %v175_v18  ;;  %v177_v21 = vld [vmem:[#allocation7 + $0x50] sm:$0xff]  ;;  %v178_v22 = vld [vmem:[#allocation7 + $0x58] sm:$0xff]  ;;  %v179_v24 = vld [vmem:[#allocation7 + $0x60] sm:$0xff] }
  0x53   :  { %v506_v23 = vpack.c.bf16 %v178_v22, %v177_v21  ;;  %v180_v25 = vld [vmem:[#allocation7 + $0x68] sm:$0xff]  ;;  %v181_v27 = vld [vmem:[#allocation7 + $0x70] sm:$0xff]  ;;  %v182_v28 = vld [vmem:[#allocation7 + $0x78] sm:$0xff] }
  0x54   :  { %450 = vmatmul.mubr.msk.f32.vlgmr.msra.gmra.mrb[0].mxu0 %vm92_vm1, %v82_v10  ;;  %v509_v26 = vpack.c.bf16 %v180_v25, %v179_v24  ;;  %v512_v29 = vpack.c.bf16 %v182_v28, %v181_v27  ;;  %v262_v30 = vld [vmem:[#allocation8 + $0x8] sm:$0xff]  ;;  %v264_v31 = vld [vmem:[#allocation8 + $0x18] sm:$0xff]  ;;  %v261_v32 = vld [vmem:[#allocation8] sm:$0xff]  ;;  %v295_v24 = vlaneseq }
  0x55   :  { %369 = vmatprep.mubr.f32.mxu0 %v696_v1  ;;  %495 = vmatpush3.bf16.msra.mxu1 %v494_v11  ;;  %v514_v33 = vpack.c.bf16 %v264_v31, %v262_v30  ;;  %v263_v34 = vld [vmem:[#allocation8 + $0x10] sm:$0xff]  ;;  %v266_v35 = vld [vmem:[#allocation8 + $0x28] sm:$0xff]  ;;  %v268_v36 = vld [vmem:[#allocation8 + $0x38] sm:$0xff] }
  0x56   :  { %496 = vmatprep.subr.bf16.mxu1 %v694_v0  ;;  %v516_v37 = vpack.c.bf16 %v263_v34, %v261_v32  ;;  %v518_v38 = vpack.c.bf16 %v268_v36, %v266_v35  ;;  %v265_v39 = vld [vmem:[#allocation8 + $0x20] sm:$0xff]  ;;  %v267_v40 = vld [vmem:[#allocation8 + $0x30] sm:$0xff]  ;;  %v270_v41 = vld [vmem:[#allocation8 + $0x48] sm:$0xff]  ;;  %v296_v25 = vshrl.u32 %v295_v24, 7 }
  0x57   :  { %515 = vmatprep.subr.bf16.mxu0 %v514_v33  ;;  %v272_v42 = vld [vmem:[#allocation8 + $0x58] sm:$0xff]  ;;  %v520_v43 = vpack.c.bf16 %v267_v40, %v265_v39  ;;  %v269_v45 = vld [vmem:[#allocation8 + $0x40] sm:$0xff]  ;;  %v271_v46 = vld [vmem:[#allocation8 + $0x50] sm:$0xff] }
  0x58   :  { %517 = vmatpush1.bf16.msra.mxu0 %v516_v37  ;;  %v522_v44 = vpack.c.bf16 %v272_v42, %v270_v41  ;;  %v274_v47 = vld [vmem:[#allocation8 + $0x68] sm:$0xff]  ;;  %v276_v48 = vld [vmem:[#allocation8 + $0x78] sm:$0xff]  ;;  %v524_v49 = vpack.c.bf16 %v271_v46, %v269_v45  ;;  %v273_v51 = vld [vmem:[#allocation8 + $0x60] sm:$0xff]  ;;  %v301_v28 = vsub.s32 1, %v296_v25 }
  0x59   :  { %498 = vmatpush3.bf16.msra.mxu1 %v497_v14  ;;  %519 = vmatprep.subr.bf16.mxu0 %v518_v38  ;;  %v526_v50 = vpack.c.bf16 %v276_v48, %v274_v47  ;;  %v275_v52 = vld [vmem:[#allocation8 + $0x70] sm:$0xff]  ;;  %v278_v53 = vld [vmem:[#allocation8 + $0x88] sm:$0xff]  ;;  %v280_v54 = vld [vmem:[#allocation8 + $0x98] sm:$0xff] }
  0x5a   :  { %499 = vmatprep.subr.bf16.mxu1 %v694_v0  ;;  %v528_v55 = vpack.c.bf16 %v275_v52, %v273_v51  ;;  %v530_v56 = vpack.c.bf16 %v280_v54, %v278_v53  ;;  %v277_v57 = vld [vmem:[#allocation8 + $0x80] sm:$0xff]  ;;  %v279_v58 = vld [vmem:[#allocation8 + $0x90] sm:$0xff]  ;;  %v282_v59 = vld [vmem:[#allocation8 + $0xa8] sm:$0xff] }
  0x5b   :  { %v284_v60 = vld [vmem:[#allocation8 + $0xb8] sm:$0xff]  ;;  %v532_v61 = vpack.c.bf16 %v279_v58, %v277_v57  ;;  %v281_v63 = vld [vmem:[#allocation8 + $0xa0] sm:$0xff]  ;;  %v286_v1 = vld [vmem:[#allocation8 + $0xc8] sm:$0xff] }
  0x5c   :  { %521 = vmatpush1.bf16.msra.mxu0 %v520_v43  ;;  %v534_v62 = vpack.c.bf16 %v284_v60, %v282_v59  ;;  %v288_v2 = vld [vmem:[#allocation8 + $0xd8] sm:$0xff]  ;;  %v285_v5 = vld [vmem:[#allocation8 + $0xc0] sm:$0xff]  ;;  %v287_v6 = vld [vmem:[#allocation8 + $0xd0] sm:$0xff] }
  0x5d   :  { %501 = vmatpush3.bf16.msra.mxu1 %v500_v17  ;;  %523 = vmatprep.subr.bf16.mxu0 %v522_v44  ;;  %v538_v4 = vpack.c.bf16 %v288_v2, %v286_v1  ;;  %v540_v7 = vpack.c.bf16 %v287_v6, %v285_v5  ;;  %v422_v8 = vld [vmem:[%s825_s2] ss:$0 sm:$0xff]  ;;  %v292_v14 = vld [vmem:[#allocation8 + $0xf8] sm:$0xff]  ;;  %v289_v16 = vld [vmem:[#allocation8 + $0xe0] sm:$0xff] }
  0x5e   :  { %502 = vmatprep.subr.bf16.mxu1 %v694_v0  ;;  %v290_v13 = vld [vmem:[#allocation8 + $0xe8] sm:$0xff]  ;;  %v291_v17 = vld [vmem:[#allocation8 + $0xf0] sm:$0xff] }
  0x5f   :  { %v542_v15 = vpack.c.bf16 %v292_v14, %v290_v13  ;;  %v544_v18 = vpack.c.bf16 %v291_v17, %v289_v16  ;;  %v424_v19 = vld [vmem:[%s827_s4] ss:$0 sm:$0xff] }
  0x60   :  { %525 = vmatpush1.bf16.msra.mxu0 %v524_v49  ;;  %v293_v27 = vld [vmem:[%s829_s6] sm:$0x3] }
  0x61   :  { %504 = vmatpush3.bf16.msra.mxu1 %v503_v20  ;;  %527 = vmatprep.subr.bf16.mxu0 %v526_v50  ;;  %v302_v30 = vrot.slane %v293_v27, %v301_v28 }
  0x62   :  { %505 = vmatprep.subr.bf16.mxu1 %v694_v0 }
  0x64   :  { %529 = vmatpush1.bf16.msra.mxu0 %v528_v55 }
  0x65   :  { %507 = vmatpush3.bf16.msra.mxu1 %v506_v23  ;;  %531 = vmatprep.subr.bf16.mxu0 %v530_v56 }
  0x66   :  { %508 = vmatprep.subr.bf16.mxu1 %v694_v0 }
  0x68   :  { %533 = vmatpush1.bf16.msra.mxu0 %v532_v61 }
  0x69   :  { %510 = vmatpush3.bf16.msra.mxu1 %v509_v26  ;;  %535 = vmatprep.subr.bf16.mxu0 %v534_v62  ;;  %v297_v26 = vsub.s32 0, %v296_v25 }
  0x6a   :  { %511 = vmatprep.subr.bf16.mxu1 %v694_v0  ;;  %v283_v0 = vld [vmem:[#allocation8 + $0xb0] sm:$0xff] }
  0x6b   :  { %v536_v3 = vpack.c.bf16 %v283_v0, %v281_v63 }
  0x6d   :  { %513 = vmatpush3.bf16.msra.mxu1 %v512_v29  ;;  %537 = vmatpush1.bf16.msra.mxu0 %v536_v3  ;;  %v298_v29 = vrot.slane %v293_v27, %v297_v26 }
  0x6e   :  { %539 = vmatprep.subr.bf16.mxu0 %v538_v4 }
  0x71   :  { %541 = vmatpush1.bf16.msra.mxu0 %v540_v7 }
  0x72   :  { %543 = vmatprep.subr.bf16.mxu0 %v542_v15 }
  0x75   :  { %545 = vmatpush1.bf16.msra.mxu0 %v544_v18 }
 0x127   :  { %v162_v9 = vpop.f32.mrb[0].mxu0 }
 0x128   :  { %v163_v10 = vadd.f32 %v422_v8, %v162_v9  ;;  %v451_v11 = vpop.f32.mrb[1].mxu0 }
 0x12a   :  { %v166_v12 = vmax.f32 %v163_v10, 0.0 }
 0x12c   :  { %485 = vmatmul.mubr.f32.vlgmr.msra.gmra.mrb[0].mxu1 %v166_v12 }
 0x1ff   :  { %v256_v20 = vpop.f32.mrb[0].mxu1 }
 0x200   :  { %v257_v21 = vadd.f32 %v424_v19, %v256_v20  ;;  %v486_v22 = vpop.f32.mrb[1].mxu1 }
 0x202   :  { %v260_v23 = vmax.f32 %v257_v21, 0.0 }
 0x204   :  { %370 = vmatmul.mubr.f32.vlgmr.msra.gmra.mrb[2].mxu0 %v260_v23 }
 0x2d7   :  { %v371_v31 = vpop.f32.mrb[2].mxu0 }
 0x2d8   :  { %v372_v32 = vadd.f32 %v371_v31, %v298_v29  ;;  %v373_v33 = vpop.f32.mrb[3].mxu0 }
 0x2d9   :  { %v374_v34 = vadd.f32 %v373_v33, %v302_v30 }
 0x2da   :  { %560 = vtanh.f32 %v372_v32 }
 0x2db   :  { %v379_v35 = vand.u32 2147483647, %v374_v34  ;;  %v378_v49 = vmax.f32 %v374_v34, 0.0 }
 0x2dd   :  { %v380_v36 = vsub.f32 0.0, %v379_v35 }
 0x2df   :  { %v381_v37 = vmul.f32 1.442695, %v380_v36 }
 0x2e1   :  { %562 = vpow2.f32 %v381_v37 }
 0x2e4   :  { %v561_v38 = vpop.eup %560 }
 0x2e5   :  { %v377_v39 = vmul.f32 2.0, %v561_v38 }
 0x2e7   :  { %v394_v40 = vcombine.high %v377_v39, %v377_v39  ;;  %396 = vst [vmem:[#allocation10] sm:$0xf] %v377_v39 }
 0x2e9   :  { %397 = vst [vmem:[#allocation10 + $0x8] sm:$0xf] %v394_v40 }
 0x2eb   :  { %v563_v41 = vpop.eup %562 }
 0x2ec   :  { %v383_v42 = vadd.f32 1.0, %v563_v41  ;;  %v386_v43 = vmul.f32 -0.5, %v563_v41  ;;  %v389_v45 = vand.u32 2147483647, %v563_v41 }
 0x2ee   :  { %564 = vlog2.f32 %v383_v42  ;;  %v387_v44 = vadd.f32 1.0, %v386_v43  ;;  %vm390_vm2 = vcmp.lt.f32.partialorder %v389_v45, 0.0004427343 }
 0x2f0   :  { %v388_v48 = vmul.f32 %v563_v41, %v387_v44 }
 0x2f8   :  { %v565_v46 = vpop.eup %564 }
 0x2f9   :  { %v385_v47 = vmul.f32 0.6931472, %v565_v46 }
 0x2fb   :  { %v391_v50 = vsel %vm390_vm2, %v388_v48, %v385_v47 }
 0x2fc   :  { %v392_v51 = vadd.f32 %v391_v50, %v378_v49 }
 0x2fe   :  { %v399_v52 = vcombine.high %v392_v51, %v392_v51  ;;  %401 = vst [vmem:[#allocation10 + $0x4] sm:$0xf] %v392_v51 }
 0x300   :  { %402 = vst [vmem:[#allocation10 + $0xc] sm:$0xf] %v399_v52 }
 0x301   :  { %407 = vsyncadd [#allocation4], 128  ;;  %s697_s4 = smov [#allocation10]  }
 0x302   :  { %s408_s6 = sshll.u32 %s697_s4, 4  ;;  %s409_s6 = int_to_ptr.vmem [resolvable:$true] %s408_s6 }
 0x303   :  { %s654_s14 = scalar_lea.vmem %s409_s6, 128  ;;  %s658_s15 = scalar_lea.vmem %s409_s6, 256 }
 0x304   :  { %p655_p4 = scmp.ne.s32.totalorder %s409_s6, %s654_s14  ;;  %p659_p5 = scmp.lt.s32.totalorder %s409_s6, %s409_s6 }
 0x305   :  { %p660_p6 = scmp.lt.s32.totalorder %s658_s15, %s654_s14 }
 0x307   :  { %p661_p7 = por %p660_p6, %p659_p5 }
 0x309   :  { %p662_p8 = pnand %p661_p7, %p655_p4 }
 0x30b   :  { %665 = shalt.err (!%p662_p8)
}
 0x30c   :  { %s666_s19 = scalar_lea.hbm %s830_s7, 128 }
 0x30d   :  { %p667_p9 = scmp.ne.s32.totalorder %s830_s7, %s666_s19  ;;  %p670_p10 = scmp.lt.u32.totalorder %s666_s19, %s830_s7 }
 0x30f   :  { %p672_p11 = pnand %p670_p10, %p667_p9 }
 0x311   :  { %675 = shalt.err (!%p672_p11)
}
 0x312   :  { %414 = dma.vmem_to_hbm [thread:$0]  %s409_s6, 128, %s830_s7, [#allocation4], %s685_s11, %s685_s11, %s686_s12  }
 0x313   :  { %682 = dma.done.wait [#allocation4], 256  }
 0x314   :  { %683 = vsyncadd [#allocation4], 4294967040 }
 0x315   :  { %418 = vsyncpa [#allocation3], 1 }
 0x316   :  { %419 = vsyncpa [#allocation6], 1 }
 0x317   :  { %420 = vsyncpa [#allocation9], 1 }
 0x318   :  { %421 = vsyncpa [#allocation4], 1 }

</bundles_post_ra>
